<compile_context>
chip_gen: v6e
topology: v6e:2x2x1
jax: 0.10.0
libtpu: 0.0.40
codegen_flags: <defaults>
</compile_context>

<pallas_src>
import math

import jax
import jax.numpy as jnp
import numpy as np
from jax.experimental import pallas as pl
from jax.experimental.pallas import tpu as pltpu


# ------------------------------ Pallas kernels ------------------------------

def _lowrank_weight_kernel(wu_ref, wd_ref, o_ref):
    # Dense weight reconstruction:  (Cout*K, rank*K) @ (rank*K, Cin*K) on the MXU.
    o_ref[...] = jnp.dot(
        wu_ref[...], wd_ref[...], preferred_element_type=jnp.float32
    ).astype(o_ref.dtype)


def _make_conv_kernel(*, K, stride, dilation, tile_h, Wout, strip_rows,
                      Cin, Cout, fuse_taps):
    s, d = stride, dilation
    P = tile_h * Wout

    def kernel(x_hbm, w_ref, b_ref, o_ref, xbuf, sem):
        # x_hbm : (N, Hp_pad, Wp, Cin)     raw HBM ref (pl.ANY)
        # w_ref : (K*K, Cin, Cout)         whole-array VMEM block (constant index_map)
        # b_ref : (1, Cout)                f32
        # o_ref : (1, Cout, tile_h*Wout)   lane-dense NCHW-flat output block
        # xbuf  : (2, strip_rows, Wp, Cin) manual strip double buffer
        # sem   : DMA semaphores, one per strip slot
        n = pl.program_id(0)
        i = pl.program_id(1)
        num_i = pl.num_programs(1)
        slot = i % 2

        def strip_copy(tile_idx, slot_idx):
            row0 = tile_idx * (tile_h * s)
            return pltpu.make_async_copy(
                x_hbm.at[n, pl.ds(row0, strip_rows)],
                xbuf.at[slot_idx],
                sem.at[slot_idx])

        # Prime the pipeline at the first h-tile of this image (only exposed DMA).
        @pl.when(i == 0)
        def _():
            strip_copy(i, slot).start()

        # Prefetch the next h-tile's strip; it runs while this tile computes.
        # (h-tile axis is "arbitrary" => the next step on this core is i+1.)
        @pl.when(i + 1 < num_i)
        def _():
            strip_copy(jnp.minimum(i + 1, num_i - 1), 1 - slot).start()

        strip_copy(i, slot).wait()
        xcur = xbuf.at[slot]

        # K*K shifted windows of the strip, each reshaped to (tile_h*Wout, Cin).
        parts = []
        for kh in range(K):
            for kw in range(K):
                r0, c0 = kh * d, kw * d
                if s == 1:
                    part = xcur[r0:r0 + tile_h, c0:c0 + Wout, :]
                else:
                    part = xcur[pl.ds(r0, tile_h, s), pl.ds(c0, Wout, s), :]
                parts.append(part.reshape(P, Cin))

        if fuse_taps:
            # Single MXU contraction over (kh, kw, cin): fills the contraction dim
            # even for small Cin and does one accumulator pass instead of K*K.
            win = jnp.concatenate(parts, axis=-1)               # (P, K*K*Cin)
            wf = w_ref[...].reshape(K * K * Cin, Cout)
            acc = jnp.dot(win, wf, preferred_element_type=jnp.float32) + b_ref[...]
        else:
            # Per-tap path (Cin already fills the MXU); accumulator initialised
            # from the bias: no separate zero-init / bias-add passes.
            acc = jnp.broadcast_to(b_ref[...], (P, Cout))
            for t, part in enumerate(parts):
                acc = acc + jnp.dot(part, w_ref[t],
                                    preferred_element_type=jnp.float32)

        # Lane-dense (Cout, tile_h*Wout) store => output is NCHW-flat directly.
        o_ref[0] = acc.T.astype(o_ref.dtype)

    return kernel


# ------------------------- tile / VMEM sizing helpers -------------------------

def _vmem_capacity_bytes():
    try:
        return int(pltpu.get_tpu_info().vmem_capacity_bytes)
    except Exception:
        return 64 * 1024 * 1024   # conservative fallback: v7x per-TensorCore VMEM


def _conv_vmem_bytes(tile_h, *, Wout, Wp, Cin, Cout, K, stride, dilation,
                     in_item, w_item, out_item, fuse_taps):
    """Everything that actually lives in VMEM during one grid step."""
    strip_rows = (tile_h - 1) * stride + dilation * (K - 1) + 1
    P = tile_h * Wout
    xbuf = 2 * strip_rows * Wp * Cin * in_item         # manual strip double buffer
    if fuse_taps:
        win = 2 * P * K * K * Cin * in_item            # tap slices + fused concat block
    else:
        win = 2 * P * Cin * in_item                    # one materialized tap window
    acc = P * Cout * 4                                 # f32 accumulator
    acc_t = P * Cout * out_item                        # transposed store temporary
    w = 2 * K * K * Cin * Cout * w_item                # BlockSpec double-buffers weights
    out = 2 * P * Cout * out_item                      # double-buffered output block
    bias = 4 * Cout * 4
    return xbuf + win + acc + acc_t + w + out + bias


def _pick_tile_h(*, N, Hout, Wout, cost_fn, vmem_cap):
    """Largest lane-aligned tile_h that fits the generation-aware VMEM budget,
    keeps >= 4 grid steps once available (pipeline depth / v7x megacore) and keeps
    padded-output waste small."""
    h_align = 128 // math.gcd(Wout, 128)    # keeps tile_h*Wout a multiple of 128
    budget = min(vmem_cap // 5, 28 * 1024 * 1024)
    max_cover = h_align * (-(-Hout // h_align))
    tile_h = h_align
    while tile_h * 2 <= max_cover:
        cand = tile_h * 2
        if cost_fn(cand) > budget:
            break
        n_cur = -(-Hout // tile_h)
        n_cand = -(-Hout // cand)
        if N * n_cand < 4 <= N * n_cur:          # don't collapse the grid below 4 steps
            break
        if (n_cand * cand - Hout) * 8 > Hout:    # > 12.5% wasted padded output rows
            break
        tile_h = cand
    return tile_h, h_align


# -------------------------------- Module (JAX) --------------------------------

class LowRankConv2d:
    def __init__(self, in_features, out_features, padding=0, kernel_size=3,
                 groups=1, dilation=1, stride=1, factor=8, bias=True, *, key):
        assert groups == 1  # TODO(synk): grouped-conv path not implemented in the Pallas kernel.
        self.in_features = in_features
        self.out_features = out_features
        self.kernel_size = kernel_size
        self.groups = groups
        self.padding = padding
        self.dilation = dilation
        self.stride = stride
        self.has_bias = bias

        self.rank = max(1, min(in_features // factor, out_features // factor))

        kd, ku = jax.random.split(key)
        # kaiming_uniform_(a=sqrt(5)) on a 2-D tensor -> U(-1/sqrt(fan_in), 1/sqrt(fan_in))
        fan_in_down = in_features * kernel_size
        bd = 1.0 / math.sqrt(fan_in_down)
        self.W_down = jax.random.uniform(
            kd, (self.rank * kernel_size, in_features * kernel_size),
            jnp.float32, -bd, bd)
        fan_in_up = self.rank * kernel_size
        bu = 1.0 / math.sqrt(fan_in_up)
        self.W_up = jax.random.uniform(
            ku, (out_features // groups * kernel_size, self.rank * kernel_size),
            jnp.float32, -bu, bu)
        # PyTorch module uses a zero (non-parameter) bias tensor when bias=False,
        # so a zero vector keeps numerics identical in both cases.
        self.bias = jnp.zeros((out_features,), jnp.float32)

    def dense_weight_taps(self):
        """w_taps[kh*K+kw, i, o] == ((W_up @ W_down).view(Cout, Cin, K, K))[o, i, kh, kw]."""
        wfull = pl.pallas_call(
            _lowrank_weight_kernel,
            out_shape=jax.ShapeDtypeStruct(
                (self.W_up.shape[0], self.W_down.shape[1]), jnp.float32),
        )(self.W_up, self.W_down)
        K = self.kernel_size
        W4 = wfull.reshape(self.out_features, self.in_features // self.groups, K, K)
        # Tiny tensor (K*K*Cin*Cout elems): rearrange to the kernel layout in XLA.
        return jnp.transpose(W4, (2, 3, 1, 0)).reshape(
            K * K, self.in_features // self.groups, self.out_features)

    def __call__(self, x, compute_dtype=jnp.float32, tile_h=None):
        # x: (N, Cin, H, W) NCHW (PyTorch convention).  Returns NCHW in x.dtype.
        N, Cin, H, W = x.shape
        assert Cin == self.in_features
        K, pad, s, d = self.kernel_size, self.padding, self.stride, self.dilation
        Cout = self.out_features
        out_dtype = x.dtype
        compute_dtype = jnp.dtype(compute_dtype)

        Hp = H + 2 * pad
        Wp = W + 2 * pad
        Hout = (Hp - d * (K - 1) - 1) // s + 1
        Wout = (Wp - d * (K - 1) - 1) // s + 1
        assert Hout >= 1 and Wout >= 1

        fuse_taps = Cin < 128     # Cin below MXU contraction width -> fuse the K*K taps
        vmem_cap = _vmem_capacity_bytes()
        cost_fn = lambda th: _conv_vmem_bytes(
            th, Wout=Wout, Wp=Wp, Cin=Cin, Cout=Cout, K=K, stride=s, dilation=d,
            in_item=compute_dtype.itemsize, w_item=compute_dtype.itemsize,
            out_item=jnp.dtype(out_dtype).itemsize, fuse_taps=fuse_taps)

        if tile_h is None:
            tile_h, h_align = _pick_tile_h(N=N, Hout=Hout, Wout=Wout,
                                           cost_fn=cost_fn, vmem_cap=vmem_cap)
        else:
            h_align = 128 // math.gcd(Wout, 128)
        assert tile_h > 0 and tile_h % h_align == 0

        num_h_tiles = -(-Hout // tile_h)
        Hout_pad = num_h_tiles * tile_h
        strip_rows = (tile_h - 1) * s + d * (K - 1) + 1
        Hp_needed = (Hout_pad - 1) * s + d * (K - 1) + 1
        extra_h = max(0, Hp_needed - Hp)       # extra zero rows so strips never OOB

        # Real per-step footprint -> scoped VMEM limit (generation aware; never
        # below the footprint, never above ~3/4 of physical VMEM).
        footprint = cost_fn(tile_h)
        vmem_limit = max(2 * footprint, 32 * 1024 * 1024)
        vmem_limit = min(vmem_limit, (vmem_cap * 3) // 4)
        vmem_limit = int(max(vmem_limit, footprint + 2 * 1024 * 1024))

        # XLA glue: NHWC + zero padding, already in the compute dtype (bf16 path
        # halves strip-DMA bytes and strip VMEM).
        # TODO(synk): fold the transpose+pad into the kernel (halo memset + partial
        # strip DMA straight from NCHW) to remove this extra HBM pass over the input.
        x_nhwc = jnp.transpose(x, (0, 2, 3, 1)).astype(compute_dtype)
        x_pad = jnp.pad(x_nhwc, ((0, 0), (pad, pad + extra_h), (pad, pad), (0, 0)))

        w_taps = self.dense_weight_taps().astype(compute_dtype)
        bias2d = self.bias.reshape(1, Cout)

        kernel = _make_conv_kernel(
            K=K, stride=s, dilation=d, tile_h=tile_h, Wout=Wout,
            strip_rows=strip_rows, Cin=Cin, Cout=Cout, fuse_taps=fuse_taps)

        flops = 2 * N * Hout_pad * Wout * Cin * Cout * K * K
        bytes_accessed = (x_pad.size * x_pad.dtype.itemsize
                          + w_taps.size * w_taps.dtype.itemsize
                          + N * Cout * Hout_pad * Wout * jnp.dtype(out_dtype).itemsize)

        out = pl.pallas_call(
            kernel,
            out_shape=jax.ShapeDtypeStruct((N, Cout, Hout_pad * Wout), out_dtype),
            grid_spec=pltpu.PrefetchScalarGridSpec(
                num_scalar_prefetch=0,
                grid=(N, num_h_tiles),
                in_specs=[
                    pl.BlockSpec(memory_space=pl.ANY),                 # padded input (HBM)
                    pl.BlockSpec((K * K, Cin, Cout), lambda n, i: (0, 0, 0)),
                    pl.BlockSpec((1, Cout), lambda n, i: (0, 0)),
                ],
                out_specs=pl.BlockSpec((1, Cout, tile_h * Wout),
                                       lambda n, i: (n, 0, i)),
                scratch_shapes=[
                    pltpu.VMEM((2, strip_rows, Wp, Cin), compute_dtype),
                    pltpu.SemaphoreType.DMA((2,)),
                ],
            ),
            # Batch axis "parallel" (megacore shards images); h-tile axis "arbitrary"
            # so it iterates sequentially per image, which makes the strip-prefetch
            # chain (i -> i+1) exact and safe.
            compiler_params=pltpu.CompilerParams(
                dimension_semantics=("parallel", "arbitrary"),
                vmem_limit_bytes=vmem_limit),
            cost_estimate=pl.CostEstimate(
                flops=int(flops), transcendentals=0,
                bytes_accessed=int(bytes_accessed)),
        )(x_pad, w_taps, bias2d)

        out = out.reshape(N, Cout, Hout_pad, Wout)     # free split of the flat dim
        if Hout_pad != Hout:
            out = out[:, :, :Hout, :]
        return out                                      # NCHW, no final transpose


# ----------------------------------- main -----------------------------------

if __name__ == "__main__":
    key = jax.random.PRNGKey(0)
    kparam, kx = jax.random.split(key)

    in_features, out_features = 8, 16
    mod = LowRankConv2d(in_features, out_features, padding=1, kernel_size=3,
                        groups=1, dilation=1, stride=1, factor=8, bias=True,
                        key=kparam)

    x = jax.random.normal(kx, (2, in_features, 16, 16), jnp.float32)

    # Pure-JAX reference of the same forward pass.
    W4 = (mod.W_up @ mod.W_down).reshape(out_features, in_features, 3, 3)
    ref = jax.lax.conv_general_dilated(
        x, W4, window_strides=(1, 1), padding=((1, 1), (1, 1)),
        rhs_dilation=(1, 1), dimension_numbers=("NCHW", "OIHW", "NCHW"),
        feature_group_count=1) + mod.bias.reshape(1, -1, 1, 1)

    # f32 compute path (auto-picked tile_h; picks 2 h-tiles -> exercises the
    # double-buffered strip prefetch chain).
    out = jax.block_until_ready(mod(x))
    np.testing.assert_allclose(np.asarray(out), np.asarray(ref),
                               rtol=1e-4, atol=1e-4)

    # bf16 MXU path (v6e/v7x fast path) with f32 accumulation; tile_h forced to 8
    # so the multi-tile prefetch path is exercised with explicit tiling too.
    out_bf16 = jax.block_until_ready(mod(x, compute_dtype=jnp.bfloat16, tile_h=8))
    np.testing.assert_allclose(np.asarray(out_bf16), np.asarray(ref),
                               rtol=1e-1, atol=1e-1)

    print("KERNEL_OK")
</pallas_src>

<mosaic_0001>
module attributes {stable_mosaic.version = 11 : i64} {
  func.func @_lowrank_weight_kernel(%arg0: memref<48x3xf32, #tpu.memory_space<vmem>>, %arg1: memref<3x24xf32, #tpu.memory_space<vmem>>, %arg2: memref<48x24xf32, #tpu.memory_space<vmem>>) attributes {dimension_semantics = [], scalar_prefetch = 0 : i64, scratch_operands = 0 : i64, tpu.core_type = #tpu.core_type<tc>} {
    %c0 = arith.constant 0 : index
    %c0_0 = arith.constant 0 : index
    %0 = vector.load %arg0[%c0, %c0_0] : memref<48x3xf32, #tpu.memory_space<vmem>>, vector<48x3xf32>
    %c0_1 = arith.constant 0 : index
    %c0_2 = arith.constant 0 : index
    %1 = vector.load %arg1[%c0_1, %c0_2] : memref<3x24xf32, #tpu.memory_space<vmem>>, vector<3x24xf32>
    %cst = arith.constant dense<0.000000e+00> : vector<48x24xf32>
    %2 = tpu.matmul %0, %1, %cst {dimension_numbers = #tpu.dot_dimension_numbers<[1], [0], [0], [1], [0, 0, 1, 1], [], []>} : vector<48x3xf32>, vector<3x24xf32>, vector<48x24xf32> -> vector<48x24xf32>
    %c0_3 = arith.constant 0 : index
    %c0_4 = arith.constant 0 : index
    %3 = vector.load %arg2[%c0_3, %c0_4] : memref<48x24xf32, #tpu.memory_space<vmem>>, vector<48x24xf32>
    tpu.vector_store %arg2[%c0_3, %c0_4], %2 {strides = array<i32>} : memref<48x24xf32, #tpu.memory_space<vmem>>, vector<48x24xf32>,
    return
  }
}

</mosaic_0001>

<bundles_post_ra>
// kernel: tpu_custom_call.1
= control target key start
LH: loop header
LB: loop body
LE: loop exit
PB: predicated region body
PF: predicated region fallthrough
CT: control target
= control target key end

     0   :  { %vm37_vm0 = vcmask 1042432   ;;  %vm18_vm1 = vcmask 23552   ;;  %vm136_vm2 = vcmask 195584   ;;  %s234_s1 = inlined_call_operand.vmem [shape: f32[3,24], index: 1, kind: input, shape index: {}]   ;;  %s235_s0 = inlined_call_operand.vmem [shape: f32[48,3], index: 0, kind: input, shape index: {}]   ;;  %s236_s2 = inlined_call_operand.vmem [shape: f32[48,24], index: 2, kind: output, shape index: {}]  }
   0x1   :  { %v17_v0 = vld [vmem:[%s234_s1] sm:$0x7]  ;;  %v13_v1 = vld [vmem:[%s235_s0 + $0x10] sm:$0xff]  ;;  %v14_v2 = vld [vmem:[%s235_s0 + $0x18] sm:$0xff] }
   0x2   :  { %172 = vmatprep.subr.msk.mxu1 %vm37_vm0, %v17_v0  ;;  %166 = vmatprep.mubr.msk.f32.mxu1 %vm18_vm1, %v13_v1  ;;  %v11_v3 = vld [vmem:[%s235_s0] sm:$0xff]  ;;  %v12_v5 = vld [vmem:[%s235_s0 + $0x8] sm:$0xff] }
   0x3   :  { %v15_v4 = vld [vmem:[%s235_s0 + $0x20] sm:$0xff]  ;;  %173 = vmatpush3.msk.msra.mxu1 %vm37_vm0, %v17_v0  ;;  %161 = vmatprep.subr.msk.mxu0 %vm37_vm0, %v17_v0  ;;  %v16_v6 = vld [vmem:[%s235_s0 + $0x28] sm:$0xff] }
   0x4   :  { %167 = vmatmul.mubr.msk.f32.vlgmr.msra.gmra.mxu1 %vm18_vm1, %v14_v2  ;;  %162 = vmatpush3.msk.msra.mxu0 %vm37_vm0, %v17_v0 }
   0x5   :  { %163 = vmatprep.mubr.msk.f32.mxu0 %vm18_vm1, %v11_v3  ;;  %169 = vmatprep.mubr.msk.f32.mxu1 %vm18_vm1, %v15_v4 }
   0x6   :  { %164 = vmatmul.mubr.msk.f32.vlgmr.msra.gmra.mxu0 %vm18_vm1, %v12_v5 }
   0x8   :  { %170 = vmatmul.mubr.msk.f32.gmra.mxu1 %vm18_vm1, %v16_v6 }
  0xc4   :  { %v168_v7 = vpop.f32.mrf.mxu1 }
  0xc5   :  { %140 = vst.msk [vmem:[%s236_s2 + $0x18] sm:$0xff] %vm136_vm2, %v168_v7 }
  0xc6   :  { %v165_v8 = vpop.f32.mrf.mxu0  ;;  %v117_v9 = vpop.f32.mrf.mxu1 }
  0xc7   :  { %138 = vst.msk [vmem:[%s236_s2 + $0x8] sm:$0xff] %vm136_vm2, %v165_v8  ;;  %139 = vst.msk [vmem:[%s236_s2 + $0x10] sm:$0xff] %vm136_vm2, %v117_v9 }
  0xc8   :  { %v107_v10 = vpop.f32.mrf.mxu0  ;;  %v171_v11 = vpop.f32.mrf.mxu1 }
  0xc9   :  { %137 = vst.msk [vmem:[%s236_s2] sm:$0xff] %vm136_vm2, %v107_v10  ;;  %142 = vst.msk [vmem:[%s236_s2 + $0x28] sm:$0xff] %vm136_vm2, %v171_v11 }
  0xca   :  { %v127_v12 = vpop.f32.mrf.mxu1 }
  0xcb   :  { %141 = vst.msk [vmem:[%s236_s2 + $0x20] sm:$0xff] %vm136_vm2, %v127_v12 }

</bundles_post_ra>
